<compile_context>
chip_gen: v7x
topology: tpu7x:2x2x1
jax: 0.10.0
libtpu: 0.0.40
codegen_flags: <defaults>
</compile_context>

<pallas_src>
import functools

import jax
import jax.numpy as jnp
from jax.experimental import pallas as pl
from jax.experimental.pallas import tpu as pltpu

_TAPS = ((-1, -1), (-1, 0), (-1, 1),
         (0, -1), (0, 0), (0, 1),
         (1, -1), (1, 0), (1, 1))


def _div_mod(pos, d):
    """Integer div/mod, using shifts/ands when d is a power of two."""
    if d & (d - 1) == 0:
        return pos >> (d.bit_length() - 1), pos & (d - 1)
    return pos // d, pos % d


def _pred_decoder_kernel(x_ref, w1_ref, b1_ref, w2_ref, b2_ref, o_ref,
                         *, N, H, W, C_mid, C_out):
    # x_ref : (C_in, L)  VMEM   L = N*H*W, space(+batch) on lanes, channels on sublanes
    # w1_ref: (9, C_mid, C_in) VMEM   per-tap 3x3 conv weights
    # b1_ref: (C_mid, 1) VMEM
    # w2_ref: (C_out*C_mid,)  SMEM   1x1 conv weights (row-major over C_out)
    # b2_ref: (C_out,)        SMEM
    # o_ref : (C_out, L) VMEM
    HW = H * W
    L = N * HW
    x = x_ref[...]                                   # (C_in, L)

    # Per-image spatial coordinates (lane-axis iota), hoisted border masks.
    pos = jax.lax.broadcasted_iota(jnp.int32, (1, L), 1)
    _, p = _div_mod(pos, HW)                         # position inside its image
    yy, xx = _div_mod(p, W)
    top = yy == 0
    bot = yy == H - 1
    left = xx == 0
    right = xx == W - 1

    # 3x3 conv as 9 accumulating (C_mid,C_in)x(C_in,L) MXU dots (no im2col
    # concat).  b1 folded into the accumulator init.
    acc = jnp.broadcast_to(b1_ref[...], (C_mid, L))  # f32
    for t, (oy, ox) in enumerate(_TAPS):
        d = oy * W + ox                              # out[l] = x[l + d]
        sh = (-d) % L
        shifted = x if sh == 0 else pltpu.roll(x, shift=sh, axis=1)
        inv = None
        if oy < 0:
            inv = top
        elif oy > 0:
            inv = bot
        if ox < 0:
            inv = left if inv is None else (inv | left)
        elif ox > 0:
            inv = right if inv is None else (inv | right)
        tap = shifted if inv is None else jnp.where(inv, 0.0, shifted)
        acc = acc + jnp.dot(w1_ref[t], tap, preferred_element_type=jnp.float32)

    hidden = jnp.maximum(acc, 0.0)                   # (C_mid, L), VPU ReLU

    # 1x1 conv epilogue on the VPU (M=1, K=C_mid is a waste of the MXU):
    # unrolled weighted sum of sublane rows with scalar weights from SMEM.
    rows = []
    for c in range(C_out):
        row = hidden[0:1, :] * w2_ref[c * C_mid + 0]
        for j in range(1, C_mid):
            row = row + hidden[j:j + 1, :] * w2_ref[c * C_mid + j]
        rows.append(row + b2_ref[c])
    out = jnp.concatenate(rows, axis=0) if C_out > 1 else rows[0]
    o_ref[...] = out.astype(o_ref.dtype)             # (C_out, L) unmasked store


def pred_decoder_forward(x_nchw, w1, b1, w2, b2):
    """x_nchw: (N, C_in, H, W) f32.  w1: (3,3,C_in,C_mid) HWIO.  b1: (C_mid,).
    w2: (C_mid, C_out).  b2: (C_out,).  Returns (N, C_out, H, W)."""
    N, C_in, H, W = x_nchw.shape
    C_mid = w1.shape[-1]
    C_out = w2.shape[-1]
    HW = H * W
    L = N * HW

    # Fold batch into the lane axis (tiny transpose; enables one grid step).
    x_flat = jnp.transpose(x_nchw.reshape(N, C_in, HW), (1, 0, 2)).reshape(C_in, L)
    # (3,3,C_in,C_mid) -> (9, C_mid, C_in): taps-major, one (C_mid,C_in) per tap.
    w1_k = jnp.transpose(w1.reshape(9, C_in, C_mid), (0, 2, 1))
    b1_2d = b1.reshape(C_mid, 1)
    w2_flat = jnp.transpose(w2).reshape(C_out * C_mid)   # (C_out, C_mid) row-major
    b2_flat = b2.reshape(C_out)

    kernel = functools.partial(_pred_decoder_kernel,
                               N=N, H=H, W=W, C_mid=C_mid, C_out=C_out)

    out_flat = pl.pallas_call(
        kernel,
        out_shape=jax.ShapeDtypeStruct((C_out, L), x_nchw.dtype),
        grid_spec=pltpu.PrefetchScalarGridSpec(
            num_scalar_prefetch=0,
            grid=(1,),                                   # single step: overhead-bound size
            in_specs=[
                pl.BlockSpec((C_in, L), lambda i: (0, 0)),
                pl.BlockSpec((9, C_mid, C_in), lambda i: (0, 0, 0)),
                pl.BlockSpec((C_mid, 1), lambda i: (0, 0)),
                pl.BlockSpec(memory_space=pltpu.MemorySpace.SMEM),   # w2 scalars
                pl.BlockSpec(memory_space=pltpu.MemorySpace.SMEM),   # b2 scalars
            ],
            out_specs=pl.BlockSpec((C_out, L), lambda i: (0, 0)),
        ),
        compiler_params=pltpu.CompilerParams(
            dimension_semantics=("arbitrary",)),
    )(x_flat, w1_k, b1_2d, w2_flat, b2_flat)

    # (C_out, N*HW) -> (N, C_out, H, W)  (tiny reshapes/transpose).
    return jnp.transpose(out_flat.reshape(C_out, N, HW), (1, 0, 2)).reshape(
        N, C_out, H, W)


def _reference_forward(x_nchw, w1, b1, w2, b2):
    """Pure-JAX reference (lax.conv) for sanity checking."""
    y = jax.lax.conv_general_dilated(
        x_nchw, jnp.transpose(w1, (3, 2, 0, 1)),  # HWIO -> OIHW
        window_strides=(1, 1), padding="SAME",
        dimension_numbers=("NCHW", "OIHW", "NCHW"))
    y = jnp.maximum(y + b1[None, :, None, None], 0.0)
    z = jax.lax.conv_general_dilated(
        y, jnp.transpose(w2, (1, 0))[:, :, None, None],
        window_strides=(1, 1), padding="SAME",
        dimension_numbers=("NCHW", "OIHW", "NCHW"))
    return z + b2[None, :, None, None]


if __name__ == "__main__":
    key = jax.random.PRNGKey(0)
    k_x, k_w1, k_b1, k_w2, k_b2 = jax.random.split(key, 5)

    N, C_in, H, W = 2, 4, 16, 16
    C_mid, C_out = 8, 1

    x = jax.random.normal(k_x, (N, C_in, H, W), dtype=jnp.float32)
    w1 = 0.1 * jax.random.normal(k_w1, (3, 3, C_in, C_mid), dtype=jnp.float32)
    b1 = 0.1 * jax.random.normal(k_b1, (C_mid,), dtype=jnp.float32)
    w2 = 0.1 * jax.random.normal(k_w2, (C_mid, C_out), dtype=jnp.float32)
    b2 = 0.1 * jax.random.normal(k_b2, (C_out,), dtype=jnp.float32)

    out = pred_decoder_forward(x, w1, b1, w2, b2)
    jax.block_until_ready(out)

    ref = _reference_forward(x, w1, b1, w2, b2)
    assert out.shape == (N, C_out, H, W), out.shape
    assert jnp.allclose(out, ref, atol=1e-4, rtol=1e-4), float(
        jnp.max(jnp.abs(out - ref)))

    print("KERNEL_OK")
</pallas_src>

<mosaic_0001>
module attributes {stable_mosaic.version = 11 : i64} {
  func.func @_pred_decoder_kernel(%arg0: i32, %arg1: memref<4x512xf32, #tpu.memory_space<vmem>>, %arg2: memref<9x8x4xf32, #tpu.memory_space<vmem>>, %arg3: memref<8x1xf32, #tpu.memory_space<vmem>>, %arg4: memref<8xf32, #tpu.memory_space<smem>>, %arg5: memref<1xf32, #tpu.memory_space<smem>>, %arg6: memref<1x512xf32, #tpu.memory_space<vmem>>) attributes {dimension_semantics = [#tpu.dimension_semantics<arbitrary>], iteration_bounds = array<i64: 1>, scalar_prefetch = 0 : i64, scratch_operands = 0 : i64, tpu.core_type = #tpu.core_type<tc>, window_params = [{pipeline_mode = #tpu.pipeline_mode<synchronous>, transform_indices = @transform_0, window_bounds = array<i64: 4, 512>}, {pipeline_mode = #tpu.pipeline_mode<synchronous>, transform_indices = @transform_1, window_bounds = array<i64: 9, 8, 4>}, {pipeline_mode = #tpu.pipeline_mode<synchronous>, transform_indices = @transform_2, window_bounds = array<i64: 8, 1>}, {transform_indices = @transform_3, window_bounds = array<i64: 8>}, {transform_indices = @transform_4, window_bounds = array<i64: 1>}, {pipeline_mode = #tpu.pipeline_mode<synchronous>, transform_indices = @transform_5, window_bounds = array<i64: 1, 512>}]} {
    %c0 = arith.constant 0 : index
    %c0_0 = arith.constant 0 : index
    %0 = vector.load %arg1[%c0, %c0_0] : memref<4x512xf32, #tpu.memory_space<vmem>>, vector<4x512xf32>
    %1 = tpu.iota {dimensions = array<i32: 1>} : vector<1x512xi32>
    %c255_i32 = arith.constant 255 : i32
    %2 = vector.broadcast %c255_i32 : i32 to vector<1x512xi32>
    %3 = arith.andi %1, %2 : vector<1x512xi32>
    %c4_i32 = arith.constant 4 : i32
    %4 = vector.broadcast %c4_i32 : i32 to vector<1x512xi32>
    %5 = arith.shrsi %3, %4 : vector<1x512xi32>
    %c15_i32 = arith.constant 15 : i32
    %6 = vector.broadcast %c15_i32 : i32 to vector<1x512xi32>
    %7 = arith.andi %3, %6 : vector<1x512xi32>
    %c0_i32 = arith.constant 0 : i32
    %8 = vector.broadcast %c0_i32 : i32 to vector<1x512xi32>
    %9 = arith.cmpi eq, %5, %8 : vector<1x512xi32>
    %c15_i32_1 = arith.constant 15 : i32
    %10 = vector.broadcast %c15_i32_1 : i32 to vector<1x512xi32>
    %11 = arith.cmpi eq, %5, %10 : vector<1x512xi32>
    %c0_i32_2 = arith.constant 0 : i32
    %12 = vector.broadcast %c0_i32_2 : i32 to vector<1x512xi32>
    %13 = arith.cmpi eq, %7, %12 : vector<1x512xi32>
    %c15_i32_3 = arith.constant 15 : i32
    %14 = vector.broadcast %c15_i32_3 : i32 to vector<1x512xi32>
    %15 = arith.cmpi eq, %7, %14 : vector<1x512xi32>
    %c0_4 = arith.constant 0 : index
    %c0_5 = arith.constant 0 : index
    %16 = vector.load %arg3[%c0_4, %c0_5] : memref<8x1xf32, #tpu.memory_space<vmem>>, vector<8x1xf32>
    %17 = vector.shape_cast %16 : vector<8x1xf32> to vector<8x1xf32>
    %18 = vector.broadcast %17 : vector<8x1xf32> to vector<8x512xf32>
    %c17_i32 = arith.constant 17 : i32
    %19 = tpu.dynamic_rotate %0 by %c17_i32 dim 1 : vector<4x512xf32>, i32 -> vector<4x512xf32>
    %20 = arith.ori %9, %13 : vector<1x512xi1>
    %cst = arith.constant 0.000000e+00 : f32
    %21 = vector.shape_cast %20 : vector<1x512xi1> to vector<1x512xi1>
    %22 = vector.broadcast %21 : vector<1x512xi1> to vector<4x512xi1>
    %23 = vector.broadcast %cst : f32 to vector<4x512xf32>
    %24 = arith.select %22, %23, %19 : vector<4x512xi1>, vector<4x512xf32>
    %c0_6 = arith.constant 0 : index
    %c0_7 = arith.constant 0 : index
    %c0_8 = arith.constant 0 : index
    %25 = vector.load %arg2[%c0_6, %c0_7, %c0_8] : memref<9x8x4xf32, #tpu.memory_space<vmem>>, vector<1x8x4xf32>
    %26 = vector.shape_cast %25 : vector<1x8x4xf32> to vector<8x4xf32>
    %cst_9 = arith.constant dense<0.000000e+00> : vector<8x512xf32>
    %27 = tpu.matmul %26, %24, %cst_9 {dimension_numbers = #tpu.dot_dimension_numbers<[1], [0], [0], [1], [0, 0, 1, 1], [], []>} : vector<8x4xf32>, vector<4x512xf32>, vector<8x512xf32> -> vector<8x512xf32>
    %28 = arith.addf %18, %27 : vector<8x512xf32>
    %c16_i32 = arith.constant 16 : i32
    %29 = tpu.dynamic_rotate %0 by %c16_i32 dim 1 : vector<4x512xf32>, i32 -> vector<4x512xf32>
    %cst_10 = arith.constant 0.000000e+00 : f32
    %30 = vector.shape_cast %9 : vector<1x512xi1> to vector<1x512xi1>
    %31 = vector.broadcast %30 : vector<1x512xi1> to vector<4x512xi1>
    %32 = vector.broadcast %cst_10 : f32 to vector<4x512xf32>
    %33 = arith.select %31, %32, %29 : vector<4x512xi1>, vector<4x512xf32>
    %c1 = arith.constant 1 : index
    %c0_11 = arith.constant 0 : index
    %c0_12 = arith.constant 0 : index
    %34 = vector.load %arg2[%c1, %c0_11, %c0_12] : memref<9x8x4xf32, #tpu.memory_space<vmem>>, vector<1x8x4xf32>
    %35 = vector.shape_cast %34 : vector<1x8x4xf32> to vector<8x4xf32>
    %cst_13 = arith.constant dense<0.000000e+00> : vector<8x512xf32>
    %36 = tpu.matmul %35, %33, %cst_13 {dimension_numbers = #tpu.dot_dimension_numbers<[1], [0], [0], [1], [0, 0, 1, 1], [], []>} : vector<8x4xf32>, vector<4x512xf32>, vector<8x512xf32> -> vector<8x512xf32>
    %37 = arith.addf %28, %36 : vector<8x512xf32>
    %c15_i32_14 = arith.constant 15 : i32
    %38 = tpu.dynamic_rotate %0 by %c15_i32_14 dim 1 : vector<4x512xf32>, i32 -> vector<4x512xf32>
    %39 = arith.ori %9, %15 : vector<1x512xi1>
    %cst_15 = arith.constant 0.000000e+00 : f32
    %40 = vector.shape_cast %39 : vector<1x512xi1> to vector<1x512xi1>
    %41 = vector.broadcast %40 : vector<1x512xi1> to vector<4x512xi1>
    %42 = vector.broadcast %cst_15 : f32 to vector<4x512xf32>
    %43 = arith.select %41, %42, %38 : vector<4x512xi1>, vector<4x512xf32>
    %c2 = arith.constant 2 : index
    %c0_16 = arith.constant 0 : index
    %c0_17 = arith.constant 0 : index
    %44 = vector.load %arg2[%c2, %c0_16, %c0_17] : memref<9x8x4xf32, #tpu.memory_space<vmem>>, vector<1x8x4xf32>
    %45 = vector.shape_cast %44 : vector<1x8x4xf32> to vector<8x4xf32>
    %cst_18 = arith.constant dense<0.000000e+00> : vector<8x512xf32>
    %46 = tpu.matmul %45, %43, %cst_18 {dimension_numbers = #tpu.dot_dimension_numbers<[1], [0], [0], [1], [0, 0, 1, 1], [], []>} : vector<8x4xf32>, vector<4x512xf32>, vector<8x512xf32> -> vector<8x512xf32>
    %47 = arith.addf %37, %46 : vector<8x512xf32>
    %c1_i32 = arith.constant 1 : i32
    %48 = tpu.dynamic_rotate %0 by %c1_i32 dim 1 : vector<4x512xf32>, i32 -> vector<4x512xf32>
    %cst_19 = arith.constant 0.000000e+00 : f32
    %49 = vector.shape_cast %13 : vector<1x512xi1> to vector<1x512xi1>
    %50 = vector.broadcast %49 : vector<1x512xi1> to vector<4x512xi1>
    %51 = vector.broadcast %cst_19 : f32 to vector<4x512xf32>
    %52 = arith.select %50, %51, %48 : vector<4x512xi1>, vector<4x512xf32>
    %c3 = arith.constant 3 : index
    %c0_20 = arith.constant 0 : index
    %c0_21 = arith.constant 0 : index
    %53 = vector.load %arg2[%c3, %c0_20, %c0_21] : memref<9x8x4xf32, #tpu.memory_space<vmem>>, vector<1x8x4xf32>
    %54 = vector.shape_cast %53 : vector<1x8x4xf32> to vector<8x4xf32>
    %cst_22 = arith.constant dense<0.000000e+00> : vector<8x512xf32>
    %55 = tpu.matmul %54, %52, %cst_22 {dimension_numbers = #tpu.dot_dimension_numbers<[1], [0], [0], [1], [0, 0, 1, 1], [], []>} : vector<8x4xf32>, vector<4x512xf32>, vector<8x512xf32> -> vector<8x512xf32>
    %56 = arith.addf %47, %55 : vector<8x512xf32>
    %c4 = arith.constant 4 : index
    %c0_23 = arith.constant 0 : index
    %c0_24 = arith.constant 0 : index
    %57 = vector.load %arg2[%c4, %c0_23, %c0_24] : memref<9x8x4xf32, #tpu.memory_space<vmem>>, vector<1x8x4xf32>
    %58 = vector.shape_cast %57 : vector<1x8x4xf32> to vector<8x4xf32>
    %cst_25 = arith.constant dense<0.000000e+00> : vector<8x512xf32>
    %59 = tpu.matmul %58, %0, %cst_25 {dimension_numbers = #tpu.dot_dimension_numbers<[1], [0], [0], [1], [0, 0, 1, 1], [], []>} : vector<8x4xf32>, vector<4x512xf32>, vector<8x512xf32> -> vector<8x512xf32>
    %60 = arith.addf %56, %59 : vector<8x512xf32>
    %c511_i32 = arith.constant 511 : i32
    %61 = tpu.dynamic_rotate %0 by %c511_i32 dim 1 : vector<4x512xf32>, i32 -> vector<4x512xf32>
    %cst_26 = arith.constant 0.000000e+00 : f32
    %62 = vector.shape_cast %15 : vector<1x512xi1> to vector<1x512xi1>
    %63 = vector.broadcast %62 : vector<1x512xi1> to vector<4x512xi1>
    %64 = vector.broadcast %cst_26 : f32 to vector<4x512xf32>
    %65 = arith.select %63, %64, %61 : vector<4x512xi1>, vector<4x512xf32>
    %c5 = arith.constant 5 : index
    %c0_27 = arith.constant 0 : index
    %c0_28 = arith.constant 0 : index
    %66 = vector.load %arg2[%c5, %c0_27, %c0_28] : memref<9x8x4xf32, #tpu.memory_space<vmem>>, vector<1x8x4xf32>
    %67 = vector.shape_cast %66 : vector<1x8x4xf32> to vector<8x4xf32>
    %cst_29 = arith.constant dense<0.000000e+00> : vector<8x512xf32>
    %68 = tpu.matmul %67, %65, %cst_29 {dimension_numbers = #tpu.dot_dimension_numbers<[1], [0], [0], [1], [0, 0, 1, 1], [], []>} : vector<8x4xf32>, vector<4x512xf32>, vector<8x512xf32> -> vector<8x512xf32>
    %69 = arith.addf %60, %68 : vector<8x512xf32>
    %c497_i32 = arith.constant 497 : i32
    %70 = tpu.dynamic_rotate %0 by %c497_i32 dim 1 : vector<4x512xf32>, i32 -> vector<4x512xf32>
    %71 = arith.ori %11, %13 : vector<1x512xi1>
    %cst_30 = arith.constant 0.000000e+00 : f32
    %72 = vector.shape_cast %71 : vector<1x512xi1> to vector<1x512xi1>
    %73 = vector.broadcast %72 : vector<1x512xi1> to vector<4x512xi1>
    %74 = vector.broadcast %cst_30 : f32 to vector<4x512xf32>
    %75 = arith.select %73, %74, %70 : vector<4x512xi1>, vector<4x512xf32>
    %c6 = arith.constant 6 : index
    %c0_31 = arith.constant 0 : index
    %c0_32 = arith.constant 0 : index
    %76 = vector.load %arg2[%c6, %c0_31, %c0_32] : memref<9x8x4xf32, #tpu.memory_space<vmem>>, vector<1x8x4xf32>
    %77 = vector.shape_cast %76 : vector<1x8x4xf32> to vector<8x4xf32>
    %cst_33 = arith.constant dense<0.000000e+00> : vector<8x512xf32>
    %78 = tpu.matmul %77, %75, %cst_33 {dimension_numbers = #tpu.dot_dimension_numbers<[1], [0], [0], [1], [0, 0, 1, 1], [], []>} : vector<8x4xf32>, vector<4x512xf32>, vector<8x512xf32> -> vector<8x512xf32>
    %79 = arith.addf %69, %78 : vector<8x512xf32>
    %c496_i32 = arith.constant 496 : i32
    %80 = tpu.dynamic_rotate %0 by %c496_i32 dim 1 : vector<4x512xf32>, i32 -> vector<4x512xf32>
    %cst_34 = arith.constant 0.000000e+00 : f32
    %81 = vector.shape_cast %11 : vector<1x512xi1> to vector<1x512xi1>
    %82 = vector.broadcast %81 : vector<1x512xi1> to vector<4x512xi1>
    %83 = vector.broadcast %cst_34 : f32 to vector<4x512xf32>
    %84 = arith.select %82, %83, %80 : vector<4x512xi1>, vector<4x512xf32>
    %c7 = arith.constant 7 : index
    %c0_35 = arith.constant 0 : index
    %c0_36 = arith.constant 0 : index
    %85 = vector.load %arg2[%c7, %c0_35, %c0_36] : memref<9x8x4xf32, #tpu.memory_space<vmem>>, vector<1x8x4xf32>
    %86 = vector.shape_cast %85 : vector<1x8x4xf32> to vector<8x4xf32>
    %cst_37 = arith.constant dense<0.000000e+00> : vector<8x512xf32>
    %87 = tpu.matmul %86, %84, %cst_37 {dimension_numbers = #tpu.dot_dimension_numbers<[1], [0], [0], [1], [0, 0, 1, 1], [], []>} : vector<8x4xf32>, vector<4x512xf32>, vector<8x512xf32> -> vector<8x512xf32>
    %88 = arith.addf %79, %87 : vector<8x512xf32>
    %c495_i32 = arith.constant 495 : i32
    %89 = tpu.dynamic_rotate %0 by %c495_i32 dim 1 : vector<4x512xf32>, i32 -> vector<4x512xf32>
    %90 = arith.ori %11, %15 : vector<1x512xi1>
    %cst_38 = arith.constant 0.000000e+00 : f32
    %91 = vector.shape_cast %90 : vector<1x512xi1> to vector<1x512xi1>
    %92 = vector.broadcast %91 : vector<1x512xi1> to vector<4x512xi1>
    %93 = vector.broadcast %cst_38 : f32 to vector<4x512xf32>
    %94 = arith.select %92, %93, %89 : vector<4x512xi1>, vector<4x512xf32>
    %c8 = arith.constant 8 : index
    %c0_39 = arith.constant 0 : index
    %c0_40 = arith.constant 0 : index
    %95 = vector.load %arg2[%c8, %c0_39, %c0_40] : memref<9x8x4xf32, #tpu.memory_space<vmem>>, vector<1x8x4xf32>
    %96 = vector.shape_cast %95 : vector<1x8x4xf32> to vector<8x4xf32>
    %cst_41 = arith.constant dense<0.000000e+00> : vector<8x512xf32>
    %97 = tpu.matmul %96, %94, %cst_41 {dimension_numbers = #tpu.dot_dimension_numbers<[1], [0], [0], [1], [0, 0, 1, 1], [], []>} : vector<8x4xf32>, vector<4x512xf32>, vector<8x512xf32> -> vector<8x512xf32>
    %98 = arith.addf %88, %97 : vector<8x512xf32>
    %cst_42 = arith.constant 0.000000e+00 : f32
    %99 = vector.broadcast %cst_42 : f32 to vector<8x512xf32>
    %100 = arith.maximumf %98, %99 : vector<8x512xf32>
    %101 = vector.extract_strided_slice %100 {offsets = [0, 0], sizes = [1, 512], strides = [1, 1]} : vector<8x512xf32> to vector<1x512xf32>
    %c0_43 = arith.constant 0 : index
    %102 = memref.load %arg4[%c0_43] : memref<8xf32, #tpu.memory_space<smem>>
    %103 = vector.broadcast %102 : f32 to vector<1x512xf32>
    %104 = arith.mulf %101, %103 : vector<1x512xf32>
    %105 = vector.extract_strided_slice %100 {offsets = [1, 0], sizes = [1, 512], strides = [1, 1]} : vector<8x512xf32> to vector<1x512xf32>
    %c1_44 = arith.constant 1 : index
    %106 = memref.load %arg4[%c1_44] : memref<8xf32, #tpu.memory_space<smem>>
    %107 = vector.broadcast %106 : f32 to vector<1x512xf32>
    %108 = arith.mulf %105, %107 : vector<1x512xf32>
    %109 = arith.addf %104, %108 : vector<1x512xf32>
    %110 = vector.extract_strided_slice %100 {offsets = [2, 0], sizes = [1, 512], strides = [1, 1]} : vector<8x512xf32> to vector<1x512xf32>
    %c2_45 = arith.constant 2 : index
    %111 = memref.load %arg4[%c2_45] : memref<8xf32, #tpu.memory_space<smem>>
    %112 = vector.broadcast %111 : f32 to vector<1x512xf32>
    %113 = arith.mulf %110, %112 : vector<1x512xf32>
    %114 = arith.addf %109, %113 : vector<1x512xf32>
    %115 = vector.extract_strided_slice %100 {offsets = [3, 0], sizes = [1, 512], strides = [1, 1]} : vector<8x512xf32> to vector<1x512xf32>
    %c3_46 = arith.constant 3 : index
    %116 = memref.load %arg4[%c3_46] : memref<8xf32, #tpu.memory_space<smem>>
    %117 = vector.broadcast %116 : f32 to vector<1x512xf32>
    %118 = arith.mulf %115, %117 : vector<1x512xf32>
    %119 = arith.addf %114, %118 : vector<1x512xf32>
    %120 = vector.extract_strided_slice %100 {offsets = [4, 0], sizes = [1, 512], strides = [1, 1]} : vector<8x512xf32> to vector<1x512xf32>
    %c4_47 = arith.constant 4 : index
    %121 = memref.load %arg4[%c4_47] : memref<8xf32, #tpu.memory_space<smem>>
    %122 = vector.broadcast %121 : f32 to vector<1x512xf32>
    %123 = arith.mulf %120, %122 : vector<1x512xf32>
    %124 = arith.addf %119, %123 : vector<1x512xf32>
    %125 = vector.extract_strided_slice %100 {offsets = [5, 0], sizes = [1, 512], strides = [1, 1]} : vector<8x512xf32> to vector<1x512xf32>
    %c5_48 = arith.constant 5 : index
    %126 = memref.load %arg4[%c5_48] : memref<8xf32, #tpu.memory_space<smem>>
    %127 = vector.broadcast %126 : f32 to vector<1x512xf32>
    %128 = arith.mulf %125, %127 : vector<1x512xf32>
    %129 = arith.addf %124, %128 : vector<1x512xf32>
    %130 = vector.extract_strided_slice %100 {offsets = [6, 0], sizes = [1, 512], strides = [1, 1]} : vector<8x512xf32> to vector<1x512xf32>
    %c6_49 = arith.constant 6 : index
    %131 = memref.load %arg4[%c6_49] : memref<8xf32, #tpu.memory_space<smem>>
    %132 = vector.broadcast %131 : f32 to vector<1x512xf32>
    %133 = arith.mulf %130, %132 : vector<1x512xf32>
    %134 = arith.addf %129, %133 : vector<1x512xf32>
    %135 = vector.extract_strided_slice %100 {offsets = [7, 0], sizes = [1, 512], strides = [1, 1]} : vector<8x512xf32> to vector<1x512xf32>
    %c7_50 = arith.constant 7 : index
    %136 = memref.load %arg4[%c7_50] : memref<8xf32, #tpu.memory_space<smem>>
    %137 = vector.broadcast %136 : f32 to vector<1x512xf32>
    %138 = arith.mulf %135, %137 : vector<1x512xf32>
    %139 = arith.addf %134, %138 : vector<1x512xf32>
    %c0_51 = arith.constant 0 : index
    %140 = memref.load %arg5[%c0_51] : memref<1xf32, #tpu.memory_space<smem>>
    %141 = vector.broadcast %140 : f32 to vector<1x512xf32>
    %142 = arith.addf %139, %141 : vector<1x512xf32>
    %c0_52 = arith.constant 0 : index
    %c0_53 = arith.constant 0 : index
    %143 = vector.load %arg6[%c0_52, %c0_53] : memref<1x512xf32, #tpu.memory_space<vmem>>, vector<1x512xf32>
    tpu.vector_store %arg6[%c0_52, %c0_53], %142 {strides = array<i32>} : memref<1x512xf32, #tpu.memory_space<vmem>>, vector<1x512xf32>,
    return
  }
  func.func @transform_0(%arg0: i32) -> (i32, i32) {
    %c0_i32 = arith.constant 0 : i32
    %c0_i32_0 = arith.constant 0 : i32
    %c0_i32_1 = arith.constant 0 : i32
    return %c0_i32, %c0_i32_0 : i32, i32
  }
  func.func @transform_1(%arg0: i32) -> (i32, i32, i32) {
    %c0_i32 = arith.constant 0 : i32
    %c0_i32_0 = arith.constant 0 : i32
    %c0_i32_1 = arith.constant 0 : i32
    %c0_i32_2 = arith.constant 0 : i32
    return %c0_i32, %c0_i32_0, %c0_i32_1 : i32, i32, i32
  }
  func.func @transform_2(%arg0: i32) -> (i32, i32) {
    %c0_i32 = arith.constant 0 : i32
    %c0_i32_0 = arith.constant 0 : i32
    %c0_i32_1 = arith.constant 0 : i32
    return %c0_i32, %c0_i32_0 : i32, i32
  }
  func.func @transform_3(%arg0: i32) -> i32 {
    %c0_i32 = arith.constant 0 : i32
    %c0_i32_0 = arith.constant 0 : i32
    return %c0_i32 : i32
  }
  func.func @transform_4(%arg0: i32) -> i32 {
    %c0_i32 = arith.constant 0 : i32
    %c0_i32_0 = arith.constant 0 : i32
    return %c0_i32 : i32
  }
  func.func @transform_5(%arg0: i32) -> (i32, i32) {
    %c0_i32 = arith.constant 0 : i32
    %c0_i32_0 = arith.constant 0 : i32
    %c0_i32_1 = arith.constant 0 : i32
    return %c0_i32, %c0_i32_0 : i32, i32
  }
}

</mosaic_0001>

<bundles_post_ra>
// kernel: tpu_custom_call.1
= control target key start
LH: loop header
LB: loop body
LE: loop exit
PB: predicated region body
PF: predicated region fallthrough
CT: control target
= control target key end

     0   :  { %11 = vsyncpa [#allocation5], 0  ;;  %s2674_s0 = inlined_call_operand.vmem [shape: f32[4,512], index: 0, kind: input, shape index: {}]   ;;  %s2675_s1 = inlined_call_operand.vmem [shape: f32[9,8,4], index: 1, kind: input, shape index: {}]   ;;  %s2676_s2 = inlined_call_operand.vmem [shape: f32[8,1], index: 2, kind: input, shape index: {}]   ;;  %s2677_s3 = inlined_call_operand.vmem [shape: f32[8], index: 3, kind: input, shape index: {}]   ;;  %s2678_s4 = inlined_call_operand.<no memory space> [shape: f32[1], index: 4, kind: input, shape index: {}]   ;;  %s2679_s5 = inlined_call_operand.hbm [shape: f32[1,512], index: 5, kind: output, shape index: {}]  }
   0x1   :  { %12 = vsyncpa [#allocation4], 0  ;;  %s25_s20 = sshll.u32 %s2677_s3, 4  ;;  %s26_s20 = int_to_ptr.vmem [resolvable:$true] %s25_s20 }
   0x2   :  { %s2102_s21 = scalar_lea.vmem %s26_s20, 16  ;;  %p2107_p1 = scmp.lt.s32.totalorder %s26_s20, %s26_s20 }
   0x3   :  { %p2103_p0 = scmp.ne.s32.totalorder %s26_s20, %s2102_s21  ;;  %p2108_p2 = scmp.lt.s32.totalorder %s2102_s21, %s2102_s21 }
   0x5   :  { %p2109_p3 = por %p2108_p2, %p2107_p1 }
   0x7   :  { %p2110_p4 = pnand %p2109_p3, %p2103_p0 }
   0x9   :  { %2113 = shalt.err (!%p2110_p4)
}
   0xa   :  { %s2140_s22 = smov [#allocation3]  }
   0xb   :  { %28 = dma.vmem_to_smem %s26_s20, 16, %s2140_s22, [#allocation5]  }
   0xc   :  { %2136 = dma.done.wait [#allocation5], 16  }
   0xd   :  { %2137 = vsyncadd [#allocation5], 4294967280 }
   0xe   :  { %34 = sfence }
   0xf   :  { %v2189_v0 = vld [vmem:[%s2674_s0 + $0x8] sm:$0xff]  ;;  %v2194_v1 = vld [vmem:[%s2674_s0] sm:$0xff]  ;;  %s2141_s26 = smov 17   ;;  %v2142_v4 = vmov 0.0   ;;  %s2143_s0 = smov 16   ;;  %v2150_v5 = vmov 0   ;;  %v37_v7 = vlaneseq }
  0x10   :  { %86 = vrot.lane.b32.xlu1 %v2189_v0, %s2141_s26  ;;  %82 = vrot.lane.b32.xlu0 %v2194_v1, %s2141_s26  ;;  %v2200_v2 = vcombine.high %v2189_v0, %v2189_v0  ;;  %v2204_v3 = vcombine.high %v2194_v1, %v2194_v1  ;;  %s2144_s27 = smov 15   ;;  %s2145_s28 = smov 1   ;;  %v70_v6 = vld [vmem:[%s2676_s2] sm:$0xff]  ;;  %vm116_vm13 = vcmask 1043456   ;;  %vm112_vm15 = vcmask 31744   ;;  %v1987_v53 = vld [vmem:[%s2675_s1 + $0x8] sm:$0xff] }
  0x11   :  { %193 = vmatprep.mubr.f32.mxu0 %v2142_v4  ;;  %264 = vmatprep.mubr.f32.mxu1 %v2142_v4  ;;  %s2146_s29 = smov 127   ;;  %s2147_s30 = smov 113   ;;  %v2242_v8 = vand.u32 127, %v37_v7  ;;  %v111_v40 = vld [vmem:[%s2675_s1] sm:$0xff] }
  0x12   :  { %s2148_s6 = smov 112   ;;  %s2149_s7 = smov 111   ;;  %2099 = vset.pattern.permute.xlu0 %v2150_v5 }
  0x13   :  { %v39_v9 = vadd.s32 128, %v2242_v8  ;;  %v41_v10 = vadd.s32 384, %v2242_v8  ;;  %v40_v11 = vadd.s32 256, %v2242_v8  ;;  %v42_v12 = vand.u32 255, %v2242_v8  ;;  %s2152_s9 = smov [#allocation6]  }
  0x14   :  { %88 = vrot.lane.b32.xlu1 %v2200_v2, %s2141_s26  ;;  %84 = vrot.lane.b32.xlu0 %v2204_v3, %s2141_s26  ;;  %vm90_vm10 = vcmp.lt.s32.totalorder %v2242_v8, 17  ;;  %vm283_vm14 = vcmp.lt.s32.totalorder %v2242_v8, 16  ;;  %s1766_s26 = sld [smem:[#allocation3]]  ;;  %s1972_s2 = sshll.u32 %s2152_s9, 4  ;;  %s1973_s2 = int_to_ptr.vmem [resolvable:$true] %s1972_s2 }
  0x15   :  { %v43_v13 = vand.u32 255, %v39_v9  ;;  %v45_v14 = vand.u32 255, %v41_v10  ;;  %v44_v15 = vand.u32 255, %v40_v11  ;;  %v2248_v16 = vshra.s32 %v42_v12, 4  ;;  %v1994_v11 = vld [vmem:[%s2675_s1 + $0x10] sm:$0xff]  ;;  %p2119_p6 = scmp.lt.s32.totalorder %s1973_s2, %s1973_s2 }
  0x16   :  { %v2250_v17 = vand.u32 15, %v42_v12 }
  0x17   :  { %v2252_v18 = vshra.s32 %v43_v13, 4  ;;  %v2254_v19 = vand.u32 15, %v43_v13  ;;  %v2256_v20 = vshra.s32 %v45_v14, 4  ;;  %v2258_v21 = vand.u32 15, %v45_v14 }
  0x18   :  { %277 = vrot.lane.b32.xlu1 %v2204_v3, %s2143_s0  ;;  %275 = vrot.lane.b32.xlu0 %v2194_v1, %s2143_s0  ;;  %v2260_v22 = vshra.s32 %v44_v15, 4  ;;  %v2262_v23 = vand.u32 15, %v44_v15  ;;  %vm54_vm0 = vcmp.eq.s32.totalorder %v2248_v16, 0  ;;  %vm62_vm1 = vcmp.eq.s32.totalorder %v2250_v17, 0 }
  0x19   :  { %vm55_vm2 = vcmp.eq.s32.totalorder %v2252_v18, 0  ;;  %vm63_vm3 = vcmp.eq.s32.totalorder %v2254_v19, 0  ;;  %vm57_vm4 = vcmp.eq.s32.totalorder %v2256_v20, 0  ;;  %vm65_vm5 = vcmp.eq.s32.totalorder %v2258_v21, 0  ;;  %vm2274_vm6 = vmor %vm54_vm0, %vm62_vm1 }
  0x1a   :  { %vm56_vm7 = vcmp.eq.s32.totalorder %v2260_v22, 0  ;;  %vm64_vm8 = vcmp.eq.s32.totalorder %v2262_v23, 0  ;;  %vm2284_vm9 = vmor %vm55_vm2, %vm63_vm3 }
  0x1b   :  { %vm2293_vm11 = vmor %vm57_vm4, %vm65_vm5 }
  0x1c   :  { %281 = vrot.lane.b32.xlu1 %v2200_v2, %s2143_s0  ;;  %279 = vrot.lane.b32.xlu0 %v2189_v0, %s2143_s0  ;;  %vm2301_vm12 = vmor %vm56_vm7, %vm64_vm8  ;;  %s2043_s0 = sld [smem:[#allocation3 + $0x1]] }
  0x20   :  { %465 = vrot.lane.b32.xlu1 %v2204_v3, %s2144_s27  ;;  %463 = vrot.lane.b32.xlu0 %v2194_v1, %s2144_s27 }
  0x24   :  { %469 = vrot.lane.b32.xlu1 %v2200_v2, %s2144_s27  ;;  %467 = vrot.lane.b32.xlu0 %v2189_v0, %s2144_s27  ;;  %s2044_s27 = sld [smem:[#allocation3 + $0x2]] }
  0x28   :  { %657 = vrot.lane.b32.xlu1 %v2204_v3, %s2145_s28  ;;  %655 = vrot.lane.b32.xlu0 %v2194_v1, %s2145_s28 }
  0x2c   :  { %661 = vrot.lane.b32.xlu1 %v2200_v2, %s2145_s28  ;;  %659 = vrot.lane.b32.xlu0 %v2189_v0, %s2145_s28  ;;  %s2045_s28 = sld [smem:[#allocation3 + $0x3]] }
  0x30   :  { %1002 = vrot.lane.b32.xlu0 %v2194_v1, %s2146_s29  ;;  %1004 = vrot.lane.b32.xlu1 %v2204_v3, %s2146_s29 }
  0x34   :  { %1006 = vrot.lane.b32.xlu0 %v2189_v0, %s2146_s29  ;;  %1008 = vrot.lane.b32.xlu1 %v2200_v2, %s2146_s29  ;;  %s2046_s29 = sld [smem:[#allocation3 + $0x4]] }
  0x38   :  { %1190 = vrot.lane.b32.xlu0 %v2194_v1, %s2147_s30  ;;  %1192 = vrot.lane.b32.xlu1 %v2204_v3, %s2147_s30 }
  0x3c   :  { %1194 = vrot.lane.b32.xlu0 %v2189_v0, %s2147_s30  ;;  %1196 = vrot.lane.b32.xlu1 %v2200_v2, %s2147_s30  ;;  %s2047_s30 = sld [smem:[#allocation3 + $0x5]] }
  0x40   :  { %1382 = vrot.lane.b32.xlu0 %v2194_v1, %s2148_s6  ;;  %1384 = vrot.lane.b32.xlu1 %v2204_v3, %s2148_s6 }
  0x44   :  { %1386 = vrot.lane.b32.xlu0 %v2189_v0, %s2148_s6  ;;  %1388 = vrot.lane.b32.xlu1 %v2200_v2, %s2148_s6  ;;  %s2048_s6 = sld [smem:[#allocation3 + $0x6]] }
  0x48   :  { %1570 = vrot.lane.b32.xlu0 %v2194_v1, %s2149_s7  ;;  %1572 = vrot.lane.b32.xlu1 %v2204_v3, %s2149_s7 }
  0x4c   :  { %1574 = vrot.lane.b32.xlu0 %v2189_v0, %s2149_s7  ;;  %1576 = vrot.lane.b32.xlu1 %v2200_v2, %s2149_s7  ;;  %s2049_s7 = sld [smem:[#allocation3 + $0x7]] }
  0x50   :  { %73 = vperm.xlu0 %2099, %v70_v6  }
  0x82   :  { %v87_v24 = vpop.permute.xlu1 %86  ;;  %v83_v25 = vpop.permute.xlu0 %82 }
  0x86   :  { %v89_v30 = vpop.permute.xlu1 %88  ;;  %v85_v31 = vpop.permute.xlu0 %84 }
  0x87   :  { %v94_v32 = vsel %vm90_vm10, %v89_v30, %v83_v25  ;;  %v92_v33 = vsel %vm90_vm10, %v85_v31, %v87_v24  ;;  %v93_v34 = vsel %vm90_vm10, %v83_v25, %v85_v31  ;;  %v91_v35 = vsel %vm90_vm10, %v87_v24, %v89_v30 }
  0x88   :  { %v108_v36 = vsel %vm2284_vm9, 0.0, %v93_v34  ;;  %v110_v37 = vsel %vm2293_vm11, 0.0, %v91_v35  ;;  %v107_v38 = vsel %vm2274_vm6, 0.0, %v94_v32  ;;  %v109_v39 = vsel %vm2301_vm12, 0.0, %v92_v33  ;;  %v2001_v32 = vld [vmem:[%s2675_s1 + $0x18] sm:$0xff] }
  0x89   :  { %1981 = vmatprep.subr.msk.mxu0 %vm116_vm13, %v108_v36  ;;  %1984 = vmatprep.subr.msk.mxu1 %vm116_vm13, %v110_v37  ;;  %vm2680_vm6 = vcmp.eq.s32.totalorder %v2254_v19, 15  ;;  %vm471_vm9 = vcmp.lt.s32.totalorder %v2242_v8, 15  ;;  %vm66_vm10 = vcmp.eq.s32.totalorder %v2250_v17, 15  ;;  %vm68_vm12 = vcmp.eq.s32.totalorder %v2262_v23, 15  ;;  %v2029_v23 = vld [vmem:[%s2675_s1 + $0x38] sm:$0xff] }
  0x8a   :  { %v278_v41 = vpop.permute.xlu1 %277  ;;  %1982 = vmatpush1.msk.msra.mxu0 %vm116_vm13, %v107_v38  ;;  %1985 = vmatpush1.msk.msra.mxu1 %vm116_vm13, %v109_v39  ;;  %v276_v42 = vpop.permute.xlu0 %275  ;;  %vm477_vm11 = vmor %vm55_vm2, %vm2680_vm6 }
  0x8b   :  { %v286_v43 = vsel %vm283_vm14, %v276_v42, %v278_v41  ;;  %1983 = vmatmul.mubr.msk.f32.vlgmr.msra.gmra.mrb[0].mxu0 %vm112_vm15, %v111_v40  ;;  %1986 = vmatmul.mubr.msk.f32.vlgmr.msra.gmra.mrb[0].mxu1 %vm112_vm15, %v111_v40  ;;  %vm2373_vm6 = vmor %vm56_vm7, %vm68_vm12 }
  0x8c   :  { %v297_v44 = vsel %vm55_vm2, 0.0, %v286_v43  ;;  %381 = vmatprep.mubr.f32.mxu0 %v2142_v4  ;;  %452 = vmatprep.mubr.f32.mxu1 %v2142_v4  ;;  %vm2365_vm2 = vmor %vm54_vm0, %vm66_vm10 }
  0x8d   :  { %1988 = vmatprep.subr.msk.mxu0 %vm116_vm13, %v297_v44  ;;  %v2599_v44 = vstv %s2048_s6 }
  0x8e   :  { %v282_v45 = vpop.permute.xlu1 %281  ;;  %v280_v46 = vpop.permute.xlu0 %279 }
  0x8f   :  { %v287_v47 = vsel %vm283_vm14, %v282_v45, %v276_v42  ;;  %v284_v48 = vsel %vm283_vm14, %v280_v46, %v282_v45  ;;  %v285_v49 = vsel %vm283_vm14, %v278_v41, %v280_v46  ;;  %vm69_vm14 = vcmp.eq.s32.totalorder %v2258_v21, 15 }
  0x90   :  { %v296_v50 = vsel %vm54_vm0, 0.0, %v287_v47  ;;  %v298_v51 = vsel %vm56_vm7, 0.0, %v285_v49  ;;  %v299_v52 = vsel %vm57_vm4, 0.0, %v284_v48  ;;  %vm479_vm0 = vmor %vm57_vm4, %vm69_vm14  ;;  %vm663_vm4 = vcmp.lt.s32.totalorder %v2242_v8, 1 }
  0x91   :  { %1989 = vmatpush1.msk.msra.mxu0 %vm116_vm13, %v296_v50  ;;  %1991 = vmatprep.subr.msk.mxu1 %vm116_vm13, %v299_v52  ;;  %vm1010_vm7 = vcmp.lt.s32.totalorder %v2242_v8, 127  ;;  %v2601_v45 = vstv %s2049_s7 }
  0x92   :  { %v466_v54 = vpop.permute.xlu1 %465  ;;  %1992 = vmatpush1.msk.msra.mxu1 %vm116_vm13, %v298_v51  ;;  %v464_v55 = vpop.permute.xlu0 %463 }
  0x93   :  { %v474_v56 = vsel %vm471_vm9, %v464_v55, %v466_v54  ;;  %1990 = vmatmul.mubr.msk.f32.vlgmr.msra.gmra.mrb[0].mxu0 %vm112_vm15, %v1987_v53  ;;  %1993 = vmatmul.mubr.msk.f32.vlgmr.msra.gmra.mrb[0].mxu1 %vm112_vm15, %v1987_v53 }
  0x94   :  { %v489_v58 = vsel %vm477_vm11, 0.0, %v474_v56  ;;  %573 = vmatprep.mubr.f32.mxu0 %v2142_v4  ;;  %644 = vmatprep.mubr.f32.mxu1 %v2142_v4  ;;  %vm59_vm11 = vcmp.eq.s32.totalorder %v2252_v18, 15  ;;  %v2015_v56 = vld [vmem:[%s2675_s1 + $0x28] sm:$0xff] }
  0x95   :  { %1995 = vmatprep.subr.msk.mxu0 %vm116_vm13, %v489_v58 }
  0x96   :  { %v470_v60 = vpop.permute.xlu1 %469  ;;  %v468_v61 = vpop.permute.xlu0 %467 }
  0x97   :  { %v475_v62 = vsel %vm471_vm9, %v470_v60, %v464_v55  ;;  %v472_v63 = vsel %vm471_vm9, %v468_v61, %v470_v60  ;;  %v473_v5 = vsel %vm471_vm9, %v466_v54, %v468_v61  ;;  %vm58_vm9 = vcmp.eq.s32.totalorder %v2248_v16, 15 }
  0x98   :  { %v488_v6 = vsel %vm2365_vm2, 0.0, %v475_v62  ;;  %v490_v9 = vsel %vm2373_vm6, 0.0, %v473_v5  ;;  %v491_v10 = vsel %vm479_vm0, 0.0, %v472_v63  ;;  %vm2693_vm6 = vcmp.eq.s32.totalorder %v2254_v19, 15 }
  0x99   :  { %1996 = vmatpush1.msk.msra.mxu0 %vm116_vm13, %v488_v6  ;;  %1998 = vmatprep.subr.msk.mxu1 %vm116_vm13, %v491_v10  ;;  %vm61_vm2 = vcmp.eq.s32.totalorder %v2256_v20, 15  ;;  %vm1198_vm0 = vcmp.lt.s32.totalorder %v2242_v8, 113 }
  0x9a   :  { %v658_v12 = vpop.permute.xlu1 %657  ;;  %1999 = vmatpush1.msk.msra.mxu1 %vm116_vm13, %v490_v9  ;;  %v656_v13 = vpop.permute.xlu0 %655 }
  0x9b   :  { %v666_v14 = vsel %vm663_vm4, %v656_v13, %v658_v12  ;;  %1997 = vmatmul.mubr.msk.f32.vlgmr.msra.gmra.mrb[0].mxu0 %vm112_vm15, %v1994_v11  ;;  %2000 = vmatmul.mubr.msk.f32.vlgmr.msra.gmra.mrb[0].mxu1 %vm112_vm15, %v1994_v11 }
  0x9c   :  { %v677_v15 = vsel %vm63_vm3, 0.0, %v666_v14  ;;  %761 = vmatprep.mubr.f32.mxu0 %v2142_v4  ;;  %832 = vmatprep.mubr.f32.mxu1 %v2142_v4 }
  0x9d   :  { %2002 = vmatprep.subr.msk.mxu0 %vm116_vm13, %v677_v15 }
  0x9e   :  { %v662_v24 = vpop.permute.xlu1 %661  ;;  %v660_v25 = vpop.permute.xlu0 %659 }
  0x9f   :  { %v667_v26 = vsel %vm663_vm4, %v662_v24, %v656_v13  ;;  %v664_v27 = vsel %vm663_vm4, %v660_v25, %v662_v24  ;;  %v665_v28 = vsel %vm663_vm4, %v658_v12, %v660_v25  ;;  %vm2464_vm4 = vmor %vm58_vm9, %vm62_vm1  ;;  %v2022_v12 = vld [vmem:[%s2675_s1 + $0x30] sm:$0xff] }
  0xa0   :  { %v676_v29 = vsel %vm62_vm1, 0.0, %v667_v26  ;;  %v678_v30 = vsel %vm64_vm8, 0.0, %v665_v28  ;;  %v679_v31 = vsel %vm65_vm5, 0.0, %v664_v27  ;;  %vm2483_vm1 = vmor %vm61_vm2, %vm65_vm5  ;;  %vm1390_vm5 = vcmp.lt.s32.totalorder %v2242_v8, 112 }
  0xa1   :  { %2003 = vmatpush1.msk.msra.mxu0 %vm116_vm13, %v676_v29  ;;  %2005 = vmatprep.subr.msk.mxu1 %vm116_vm13, %v679_v31  ;;  %v2036_v31 = vld [vmem:[%s2675_s1 + $0x40] sm:$0xff] }
  0xa2   :  { %2006 = vmatpush1.msk.msra.mxu1 %vm116_vm13, %v678_v30  ;;  %v1003_v33 = vpop.permute.xlu0 %1002  ;;  %v1005_v34 = vpop.permute.xlu1 %1004  ;;  %2009 = vmatprep.subr.msk.mxu0 %vm116_vm13, %v2204_v3 }
  0xa3   :  { %2004 = vmatmul.mubr.msk.f32.vlgmr.msra.gmra.mrb[0].mxu0 %vm112_vm15, %v2001_v32  ;;  %2007 = vmatmul.mubr.msk.f32.vlgmr.msra.gmra.mrb[0].mxu1 %vm112_vm15, %v2001_v32  ;;  %v1013_v35 = vsel %vm1010_vm7, %v1003_v33, %v1005_v34 }
  0xa4   :  { %2012 = vmatprep.subr.msk.mxu1 %vm116_vm13, %v2200_v2  ;;  %2010 = vmatpush1.msk.msra.mxu0 %vm116_vm13, %v2194_v1  ;;  %v2008_v1 = vld [vmem:[%s2675_s1 + $0x20] sm:$0xff] }
  0xa5   :  { %920 = vmatprep.mubr.f32.mxu0 %v2142_v4  ;;  %2013 = vmatpush1.msk.msra.mxu1 %vm116_vm13, %v2189_v0  ;;  %v1023_v0 = vsel %vm66_vm10, 0.0, %v1013_v35  ;;  %v1773_v35 = vstv %s2043_s0 }
  0xa6   :  { %v1007_v36 = vpop.permute.xlu0 %1006  ;;  %v1009_v3 = vpop.permute.xlu1 %1008  ;;  %991 = vmatprep.mubr.f32.mxu1 %v2142_v4 }
  0xa7   :  { %v1012_v37 = vsel %vm1010_vm7, %v1005_v34, %v1007_v36  ;;  %v1011_v38 = vsel %vm1010_vm7, %v1007_v36, %v1009_v3  ;;  %v1014_v39 = vsel %vm1010_vm7, %v1009_v3, %v1003_v33  ;;  %vm60_vm7 = vcmp.eq.s32.totalorder %v2260_v22, 15 }
  0xa8   :  { %v1024_v40 = vsel %vm2693_vm6, 0.0, %v1012_v37  ;;  %v1026_v2 = vsel %vm69_vm14, 0.0, %v1014_v39  ;;  %v1025_v41 = vsel %vm68_vm12, 0.0, %v1011_v38  ;;  %vm2475_vm6 = vmor %vm59_vm11, %vm63_vm3  ;;  %v1795_v36 = vstv %s2044_s27 }
  0xa9   :  { %2016 = vmatprep.subr.msk.mxu0 %vm116_vm13, %v1024_v40  ;;  %2019 = vmatprep.subr.msk.mxu1 %vm116_vm13, %v1026_v2  ;;  %vm2493_vm3 = vmor %vm60_vm7, %vm64_vm8  ;;  %vm1578_vm8 = vcmp.lt.s32.totalorder %v2242_v8, 111  ;;  %v1817_v40 = vstv %s2045_s28 }
  0xaa   :  { %v1191_v42 = vpop.permute.xlu0 %1190  ;;  %v1193_v43 = vpop.permute.xlu1 %1192 }
  0xab   :  { %2011 = vmatmul.mubr.msk.f32.vlgmr.msra.gmra.mrb[0].mxu0 %vm112_vm15, %v2008_v1  ;;  %2014 = vmatmul.mubr.msk.f32.vlgmr.msra.gmra.mrb[0].mxu1 %vm112_vm15, %v2008_v1  ;;  %v1201_v47 = vsel %vm1198_vm0, %v1191_v42, %v1193_v43 }
  0xac   :  { %2017 = vmatpush1.msk.msra.mxu0 %vm116_vm13, %v1023_v0  ;;  %2020 = vmatpush1.msk.msra.mxu1 %vm116_vm13, %v1025_v41  ;;  %v1215_v57 = vsel %vm2464_vm4, 0.0, %v1201_v47  ;;  %vm2704_vm4 = vcmp.eq.s32.totalorder %v2254_v19, 15  ;;  %v1839_v0 = vstv %s2046_s29  ;;  %v2593_v41 = vstv %s2047_s30 }
  0xad   :  { %1108 = vmatprep.mubr.f32.mxu0 %v2142_v4  ;;  %1179 = vmatprep.mubr.f32.mxu1 %v2142_v4 }
  0xae   :  { %v1195_v48 = vpop.permute.xlu0 %1194  ;;  %v1197_v50 = vpop.permute.xlu1 %1196 }
  0xaf   :  { %v1200_v51 = vsel %vm1198_vm0, %v1193_v43, %v1195_v48  ;;  %v1199_v52 = vsel %vm1198_vm0, %v1195_v48, %v1197_v50  ;;  %v1202_v53 = vsel %vm1198_vm0, %v1197_v50, %v1191_v42  ;;  %vm2537_vm0 = vmor %vm58_vm9, %vm66_vm10  ;;  %v2151_v48 = vmov 1966171168  }
  0xb0   :  { %v1216_v54 = vsel %vm2475_vm6, 0.0, %v1200_v51  ;;  %v1218_v55 = vsel %vm2483_vm1, 0.0, %v1202_v53  ;;  %v1217_v58 = vsel %vm2493_vm3, 0.0, %v1199_v52  ;;  %vm2547_vm6 = vmor %vm59_vm11, %vm2704_vm4  ;;  %v2607_v49 = vunpack.c.l.s4 %v2151_v48 }
  0xb1   :  { %2023 = vmatprep.subr.msk.mxu0 %vm116_vm13, %v1216_v54  ;;  %2026 = vmatprep.subr.msk.mxu1 %vm116_vm13, %v1218_v55  ;;  %vm2555_vm10 = vmor %vm61_vm2, %vm69_vm14  ;;  %v2610_v50 = vshrl.u32 %v37_v7, 7 }
  0xb2   :  { %v1383_v59 = vpop.permute.xlu0 %1382  ;;  %v1385_v60 = vpop.permute.xlu1 %1384 }
  0xb3   :  { %2018 = vmatmul.mubr.msk.f32.vlgmr.msra.gmra.mrb[0].mxu0 %vm112_vm15, %v2015_v56  ;;  %2021 = vmatmul.mubr.msk.f32.vlgmr.msra.gmra.mrb[0].mxu1 %vm112_vm15, %v2015_v56  ;;  %v1393_v61 = vsel %vm1390_vm5, %v1383_v59, %v1385_v60 }
  0xb4   :  { %2024 = vmatpush1.msk.msra.mxu0 %vm116_vm13, %v1215_v57  ;;  %2027 = vmatpush1.msk.msra.mxu1 %vm116_vm13, %v1217_v58  ;;  %v1403_v13 = vsel %vm58_vm9, 0.0, %v1393_v61  ;;  %vm2565_vm9 = vmor %vm60_vm7, %vm68_vm12 }
  0xb5   :  { %1300 = vmatprep.mubr.f32.mxu0 %v2142_v4  ;;  %1371 = vmatprep.mubr.f32.mxu1 %v2142_v4 }
  0xb6   :  { %v1387_v62 = vpop.permute.xlu0 %1386  ;;  %v1389_v63 = vpop.permute.xlu1 %1388 }
  0xb7   :  { %v1392_v5 = vsel %vm1390_vm5, %v1385_v60, %v1387_v62  ;;  %v1391_v6 = vsel %vm1390_vm5, %v1387_v62, %v1389_v63  ;;  %v1394_v9 = vsel %vm1390_vm5, %v1389_v63, %v1383_v59 }
  0xb8   :  { %v1404_v10 = vsel %vm59_vm11, 0.0, %v1392_v5  ;;  %v1406_v11 = vsel %vm61_vm2, 0.0, %v1394_v9  ;;  %v1405_v14 = vsel %vm60_vm7, 0.0, %v1391_v6 }
  0xb9   :  { %2030 = vmatprep.subr.msk.mxu0 %vm116_vm13, %v1404_v10  ;;  %2033 = vmatprep.subr.msk.mxu1 %vm116_vm13, %v1406_v11 }
  0xba   :  { %v1571_v15 = vpop.permute.xlu0 %1570  ;;  %v1573_v24 = vpop.permute.xlu1 %1572 }
  0xbb   :  { %2025 = vmatmul.mubr.msk.f32.vlgmr.msra.gmra.mrb[0].mxu0 %vm112_vm15, %v2022_v12  ;;  %2028 = vmatmul.mubr.msk.f32.vlgmr.msra.gmra.mrb[0].mxu1 %vm112_vm15, %v2022_v12  ;;  %v1581_v16 = vsel %vm1578_vm8, %v1571_v15, %v1573_v24 }
  0xbc   :  { %2031 = vmatpush1.msk.msra.mxu0 %vm116_vm13, %v1403_v13  ;;  %2034 = vmatpush1.msk.msra.mxu1 %vm116_vm13, %v1405_v14  ;;  %v1595_v22 = vsel %vm2537_vm0, 0.0, %v1581_v16 }
  0xbd   :  { %1488 = vmatprep.mubr.f32.mxu0 %v2142_v4  ;;  %1559 = vmatprep.mubr.f32.mxu1 %v2142_v4 }
  0xbe   :  { %v1575_v17 = vpop.permute.xlu0 %1574  ;;  %v1577_v19 = vpop.permute.xlu1 %1576 }
  0xbf   :  { %v1580_v20 = vsel %vm1578_vm8, %v1573_v24, %v1575_v17  ;;  %v1579_v21 = vsel %vm1578_vm8, %v1575_v17, %v1577_v19  ;;  %v1582_v27 = vsel %vm1578_vm8, %v1577_v19, %v1571_v15 }
  0xc0   :  { %v1596_v28 = vsel %vm2547_vm6, 0.0, %v1580_v20  ;;  %v1598_v29 = vsel %vm2555_vm10, 0.0, %v1582_v27  ;;  %v1597_v30 = vsel %vm2565_vm9, 0.0, %v1579_v21 }
  0xc1   :  { %2037 = vmatprep.subr.msk.mxu0 %vm116_vm13, %v1596_v28  ;;  %2040 = vmatprep.subr.msk.mxu1 %vm116_vm13, %v1598_v29 }
  0xc3   :  { %2032 = vmatmul.mubr.msk.f32.vlgmr.msra.gmra.mrb[0].mxu0 %vm112_vm15, %v2029_v23  ;;  %2035 = vmatmul.mubr.msk.f32.vlgmr.msra.gmra.mrb[0].mxu1 %vm112_vm15, %v2029_v23 }
  0xc4   :  { %2038 = vmatpush1.msk.msra.mxu0 %vm116_vm13, %v1595_v22  ;;  %2041 = vmatpush1.msk.msra.mxu1 %vm116_vm13, %v1597_v30  ;;  %vm1963_vm13 = vcmp.lt.s32.totalorder %v37_v7, 512 }
  0xc5   :  { %1680 = vmatprep.mubr.f32.mxu0 %v2142_v4  ;;  %1751 = vmatprep.mubr.f32.mxu1 %v2142_v4  ;;  %v1767_v4 = vstv %s1766_s26 }
  0xcb   :  { %2039 = vmatmul.mubr.msk.f32.vlgmr.msra.gmra.mrb[0].mxu0 %vm112_vm15, %v2036_v31  ;;  %2042 = vmatmul.mubr.msk.f32.vlgmr.msra.gmra.mrb[0].mxu1 %vm112_vm15, %v2036_v31 }
  0xcf   :  { %v74_v32 = vpop.permute.xlu0 %73 }
 0x19e   :  { %v1682_v33 = vpop.f32.mrb[0].mxu0  ;;  %v1753_v34 = vpop.f32.mrb[0].mxu1 }
 0x19f   :  { %v2050_v3 = vadd.f32 %v1682_v33, %v74_v32  ;;  %v2052_v37 = vadd.f32 %v1753_v34, %v74_v32  ;;  %v1684_v38 = vpop.f32.mrb[1].mxu0  ;;  %v1755_v39 = vpop.f32.mrb[1].mxu1 }
 0x1a0   :  { %v2051_v2 = vadd.f32 %v1684_v38, %v74_v32  ;;  %v2053_v1 = vadd.f32 %v1755_v39, %v74_v32 }
 0x1a1   :  { %v2595_v42 = vmax.f32 %v2050_v3, 0.0  ;;  %v2597_v43 = vmax.f32 %v2052_v37, 0.0 }
 0x1a2   :  { %v2603_v46 = vmax.f32 %v2051_v2, 0.0  ;;  %v2605_v47 = vmax.f32 %v2053_v1, 0.0 }
 0x1a3   :  { %v1768_v51 = vmul.f32 %v1767_v4, %v2595_v42  ;;  %v1770_v52 = vmul.f32 %v1767_v4, %v2597_v43  ;;  %v1774_v53 = vmul.f32 %v1773_v35, %v2595_v42  ;;  %v1776_v54 = vmul.f32 %v1773_v35, %v2597_v43 }
 0x1a4   :  { %v1769_v55 = vmul.f32 %v1767_v4, %v2603_v46  ;;  %v1771_v56 = vmul.f32 %v1767_v4, %v2605_v47  ;;  %v1775_v57 = vmul.f32 %v1773_v35, %v2603_v46  ;;  %v1777_v58 = vmul.f32 %v1773_v35, %v2605_v47 }
 0x1a5   :  { %v1782_v59 = vrot.slane %v1774_v53, 1  ;;  %v1784_v60 = vrot.slane %v1776_v54, 1  ;;  %v1796_v61 = vmul.f32 %v1795_v36, %v2595_v42  ;;  %v1797_v62 = vmul.f32 %v1795_v36, %v2603_v46 }
 0x1a6   :  { %v1783_v63 = vrot.slane %v1775_v57, 1  ;;  %v1785_v5 = vrot.slane %v1777_v58, 1  ;;  %v1798_v6 = vmul.f32 %v1795_v36, %v2597_v43  ;;  %v1799_v9 = vmul.f32 %v1795_v36, %v2605_v47 }
 0x1a7   :  { %v1790_v10 = vadd.f32 %v1782_v59, %v1768_v51  ;;  %v1792_v11 = vadd.f32 %v1784_v60, %v1770_v52  ;;  %v1804_v12 = vrot.slane %v1796_v61, 2  ;;  %v1805_v13 = vrot.slane %v1797_v62, 2 }
 0x1a8   :  { %v1791_v14 = vadd.f32 %v1783_v63, %v1769_v55  ;;  %v1793_v15 = vadd.f32 %v1785_v5, %v1771_v56  ;;  %v1806_v24 = vrot.slane %v1798_v6, 2  ;;  %v1807_v25 = vrot.slane %v1799_v9, 2 }
 0x1a9   :  { %v1812_v26 = vadd.f32 %v1804_v12, %v1790_v10  ;;  %v1818_v8 = vmul.f32 %v1817_v40, %v2595_v42  ;;  %v1819_v16 = vmul.f32 %v1817_v40, %v2603_v46  ;;  %v1820_v17 = vmul.f32 %v1817_v40, %v2597_v43 }
 0x1aa   :  { %v1813_v18 = vadd.f32 %v1805_v13, %v1791_v14  ;;  %v1814_v19 = vadd.f32 %v1806_v24, %v1792_v11  ;;  %v1815_v20 = vadd.f32 %v1807_v25, %v1793_v15  ;;  %v1821_v21 = vmul.f32 %v1817_v40, %v2605_v47 }
 0x1ab   :  { %v1826_v27 = vrot.slane %v1818_v8, 3  ;;  %v1827_v28 = vrot.slane %v1819_v16, 3  ;;  %v1828_v29 = vrot.slane %v1820_v17, 3  ;;  %v1840_v23 = vmul.f32 %v1839_v0, %v2595_v42 }
 0x1ac   :  { %v1829_v22 = vrot.slane %v1821_v21, 3  ;;  %v1841_v30 = vmul.f32 %v1839_v0, %v2603_v46  ;;  %v1842_v31 = vmul.f32 %v1839_v0, %v2597_v43  ;;  %v1843_v32 = vmul.f32 %v1839_v0, %v2605_v47 }
 0x1ad   :  { %v1834_v33 = vadd.f32 %v1826_v27, %v1812_v26  ;;  %v1835_v34 = vadd.f32 %v1827_v28, %v1813_v18  ;;  %v1836_v4 = vadd.f32 %v1828_v29, %v1814_v19  ;;  %v1848_v35 = vrot.slane %v1840_v23, 4 }
 0x1ae   :  { %v1837_v36 = vadd.f32 %v1829_v22, %v1815_v20  ;;  %v1849_v3 = vrot.slane %v1841_v30, 4  ;;  %v1850_v37 = vrot.slane %v1842_v31, 4  ;;  %v1851_v38 = vrot.slane %v1843_v32, 4 }
 0x1af   :  { %v1856_v39 = vadd.f32 %v1848_v35, %v1834_v33  ;;  %v1862_v40 = vmul.f32 %v2593_v41, %v2595_v42  ;;  %v1863_v2 = vmul.f32 %v2593_v41, %v2603_v46  ;;  %v1864_v1 = vmul.f32 %v2593_v41, %v2597_v43 }
 0x1b0   :  { %v1857_v48 = vadd.f32 %v1849_v3, %v1835_v34  ;;  %v1858_v0 = vadd.f32 %v1850_v37, %v1836_v4  ;;  %v1859_v51 = vadd.f32 %v1851_v38, %v1837_v36  ;;  %v1865_v52 = vmul.f32 %v2593_v41, %v2605_v47 }
 0x1b1   :  { %v1870_v53 = vrot.slane %v1862_v40, 5  ;;  %v1871_v54 = vrot.slane %v1863_v2, 5  ;;  %v1872_v55 = vrot.slane %v1864_v1, 5  ;;  %v1884_v56 = vmul.f32 %v2599_v44, %v2595_v42 }
 0x1b2   :  { %v1873_v57 = vrot.slane %v1865_v52, 5  ;;  %v1885_v58 = vmul.f32 %v2599_v44, %v2603_v46  ;;  %v1886_v59 = vmul.f32 %v2599_v44, %v2597_v43  ;;  %v1887_v60 = vmul.f32 %v2599_v44, %v2605_v47 }
 0x1b3   :  { %v1878_v61 = vadd.f32 %v1870_v53, %v1856_v39  ;;  %v1879_v62 = vadd.f32 %v1871_v54, %v1857_v48  ;;  %v1880_v63 = vadd.f32 %v1872_v55, %v1858_v0  ;;  %v1892_v41 = vrot.slane %v1884_v56, 6 }
 0x1b4   :  { %v1881_v5 = vadd.f32 %v1873_v57, %v1859_v51  ;;  %v1893_v6 = vrot.slane %v1885_v58, 6  ;;  %v1894_v9 = vrot.slane %v1886_v59, 6  ;;  %v1895_v10 = vrot.slane %v1887_v60, 6 }
 0x1b5   :  { %v1900_v11 = vadd.f32 %v1892_v41, %v1878_v61  ;;  %v1906_v12 = vmul.f32 %v2601_v45, %v2595_v42  ;;  %v1907_v13 = vmul.f32 %v2601_v45, %v2603_v46  ;;  %v1908_v14 = vmul.f32 %v2601_v45, %v2597_v43 }
 0x1b6   :  { %v1901_v15 = vadd.f32 %v1893_v6, %v1879_v62  ;;  %v1902_v44 = vadd.f32 %v1894_v9, %v1880_v63  ;;  %v1903_v24 = vadd.f32 %v1895_v10, %v1881_v5  ;;  %v1909_v25 = vmul.f32 %v2601_v45, %v2605_v47 }
 0x1b7   :  { %v1914_v26 = vrot.slane %v1906_v12, 7  ;;  %v1915_v8 = vrot.slane %v1907_v13, 7  ;;  %v1916_v16 = vrot.slane %v1908_v14, 7  ;;  %v1940_v17 = vunpack.c.0.s8 %v2607_v49 }
 0x1b8   :  { %v1917_v18 = vrot.slane %v1909_v25, 7  ;;  %v1927_v42 = vstv %s2678_s4  ;;  %s2114_s4 = scalar_lea.vmem %s1973_s2, 64 }
 0x1b9   :  { %v1922_v46 = vadd.f32 %v1914_v26, %v1900_v11  ;;  %v1923_v19 = vadd.f32 %v1915_v8, %v1901_v15  ;;  %v1924_v20 = vadd.f32 %v1916_v16, %v1902_v44  ;;  %v1943_v29 = vsub.s32 %v1940_v17, %v2610_v50  ;;  %p2115_p5 = scmp.ne.s32.totalorder %s1973_s2, %s2114_s4  ;;  %p2120_p7 = scmp.lt.s32.totalorder %s2114_s4, %s2114_s4 }
 0x1ba   :  { %v1925_v43 = vadd.f32 %v1917_v18, %v1903_v24 }
 0x1bb   :  { %v1928_v21 = vadd.f32 %v1927_v42, %v1922_v46  ;;  %v1929_v27 = vadd.f32 %v1927_v42, %v1923_v19  ;;  %v1930_v28 = vadd.f32 %v1927_v42, %v1924_v20  ;;  %p2121_p8 = por %p2120_p7, %p2119_p6 }
 0x1bc   :  { %v1931_v45 = vadd.f32 %v1927_v42, %v1925_v43 }
 0x1bd   :  { %v1936_v47 = vcombine.low %v1928_v21, %v1929_v27  ;;  %p2122_p9 = pnand %p2121_p8, %p2115_p5 }
 0x1be   :  { %v1937_v23 = vcombine.low %v1930_v28, %v1931_v45 }
 0x1bf   :  { %v1944_v22 = vrot.slane %v1936_v47, %v1943_v29 }
 0x1c0   :  { %v1951_v30 = vrot.slane %v1937_v23, %v1943_v29 }
 0x1c2   :  { %v1952_v49 = vcombine.low %v1944_v22, %v1951_v30 }
 0x1c4   :  { %v1959_v31 = vrot.slane %v1952_v49, %v1943_v29 }
 0x1c6   :  { %1965 = vst.msk [vmem:[#allocation6] sm:$0xf] %vm1963_vm13, %v1959_v31 }
 0x1c7   :  { %2125 = shalt.err (!%p2122_p9)
}
 0x1c8   :  { %s2126_s12 = scalar_lea.hbm %s2679_s5, 64 }
 0x1c9   :  { %p2127_p10 = scmp.ne.s32.totalorder %s2679_s5, %s2126_s12  ;;  %p2130_p11 = scmp.lt.u32.totalorder %s2126_s12, %s2679_s5 }
 0x1cb   :  { %p2132_p12 = pnand %p2130_p11, %p2127_p10 }
 0x1cd   :  { %2135 = shalt.err (!%p2132_p12)
}
 0x1ce   :  { %1975 = dma.vmem_to_hbm [thread:$0]  %s1973_s2, 64, %s2679_s5, [#allocation4]  }
 0x1cf   :  { %2138 = dma.done.wait [#allocation4], 64  }
 0x1d0   :  { %2139 = vsyncadd [#allocation4], 4294967232 }
 0x1d1   :  { %1979 = vsyncpa [#allocation4], 1 }
 0x1d2   :  { %1980 = vsyncpa [#allocation5], 1 }

</bundles_post_ra>
